<compile_context>
chip_gen: v5e
topology: v5e:2x2
jax: 0.10.0
libtpu: 0.0.40
codegen_flags: <defaults>
</compile_context>

<pallas_src>
import jax
import jax.numpy as jnp
from jax.experimental import pallas as pl
from jax.experimental.pallas import tpu as pltpu

_LANE = 128


def _round_up(x: int, m: int) -> int:
    return ((x + m - 1) // m) * m


def _octave_classifier_kernel(z_ref, w_ref, b_ref, o_ref):
    # Linear: logits = z @ W^T + b  (MXU matmul, f32 accumulation, no in-kernel transpose)
    logits = jnp.dot(
        z_ref[...], w_ref[...], preferred_element_type=jnp.float32
    ) + b_ref[...]

    # Numerically stable softmax over the (short, unpadded) feature axis.
    m = jnp.max(logits, axis=-1, keepdims=True)
    e = jnp.exp(logits - m)
    denom = jnp.sum(e, axis=-1, keepdims=True)
    o_ref[...] = (e / denom).astype(o_ref.dtype)


def octave_classifier_forward(z, weight, bias, *, block_b: int = 4096,
                              use_bf16_inputs: bool = False):
    """z: (B, input_dim), weight: (out_dim, input_dim) PyTorch layout, bias: (out_dim,)."""
    B, input_dim = z.shape
    out_dim = weight.shape[0]

    # ---- one-time wrapper-side layout prep (XLA, not per grid step) ----
    in_dtype = jnp.bfloat16 if use_bf16_inputs else jnp.float32
    w_t = weight.astype(jnp.float32).T.astype(in_dtype)         # (input_dim, out_dim)
    b_row = bias.astype(jnp.float32).reshape(1, out_dim)        # (1, out_dim)
    z_in = z.astype(in_dtype)                                   # (B, input_dim)

    # ---- batch tiling: sublane-aligned tile, cdiv grid, NO row padding ----
    tb = min(block_b, _round_up(B, 8))          # multiple of 8 (sublane aligned)
    grid = (pl.cdiv(B, tb),)

    # VMEM budget: z tile + out tile (each lane-padded to 128 in VMEM), double-buffered,
    # plus resident weight/bias and headroom. Explicit limit keeps big tiles legal on
    # v5e's 16 MiB default scope while staying well under v7x's 64 MiB physical.
    elt = 2 if use_bf16_inputs else 4
    tile_bytes = tb * _LANE * elt + tb * _LANE * 4   # z tile + out tile (one buffer each)
    vmem_needed = 2 * tile_bytes + (2 << 20)          # double-buffered + headroom
    vmem_limit = int(min(max(vmem_needed, 16 << 20), 96 << 20))

    cost = pl.CostEstimate(
        flops=2 * B * input_dim * out_dim,
        transcendentals=B * out_dim,
        bytes_accessed=B * (input_dim * elt + out_dim * 4)
        + input_dim * out_dim * elt + out_dim * 4,
    )

    out = pl.pallas_call(
        _octave_classifier_kernel,
        out_shape=jax.ShapeDtypeStruct((B, out_dim), jnp.float32),
        grid_spec=pltpu.PrefetchScalarGridSpec(
            num_scalar_prefetch=0,
            grid=grid,
            in_specs=[
                pl.BlockSpec((tb, input_dim), lambda i: (i, 0)),      # z tile (pipelined)
                pl.BlockSpec((input_dim, out_dim), lambda i: (0, 0)),  # W^T resident
                pl.BlockSpec((1, out_dim), lambda i: (0, 0)),          # bias resident
            ],
            out_specs=pl.BlockSpec((tb, out_dim), lambda i: (i, 0)),   # unpadded output
        ),
        compiler_params=pltpu.CompilerParams(
            # Batch tiles are independent; HBM-bound so megacore is ~neutral, but free.
            dimension_semantics=("parallel",),
            vmem_limit_bytes=vmem_limit,
        ),
        cost_estimate=cost,
    )(z_in, w_t, b_row)

    return out


def _reference(z, weight, bias):
    logits = z @ weight.T + bias
    return jax.nn.softmax(logits, axis=-1)


if __name__ == "__main__":
    input_dim, out_dim, batch = 20, 12, 8

    key = jax.random.PRNGKey(0)
    kz, kw, kb = jax.random.split(key, 3)

    # Deterministic PyTorch-style init: U(-1/sqrt(fan_in), 1/sqrt(fan_in))
    bound = 1.0 / (input_dim ** 0.5)
    weight = jax.random.uniform(kw, (out_dim, input_dim), jnp.float32, -bound, bound)
    bias = jax.random.uniform(kb, (out_dim,), jnp.float32, -bound, bound)

    z = jax.random.normal(kz, (batch, input_dim), jnp.float32)

    out = octave_classifier_forward(z, weight, bias)
    out = jax.block_until_ready(out)

    ref = _reference(z, weight, bias)
    assert out.shape == (batch, out_dim)
    assert jnp.allclose(out, ref, atol=1e-5, rtol=1e-5)
    assert jnp.allclose(jnp.sum(out, axis=-1), 1.0, atol=1e-5)

    print("KERNEL_OK")
</pallas_src>

<mosaic_0001>
module attributes {stable_mosaic.version = 11 : i64} {
  func.func @_octave_classifier_kernel(%arg0: i32, %arg1: memref<8x20xf32, #tpu.memory_space<vmem>>, %arg2: memref<20x12xf32, #tpu.memory_space<vmem>>, %arg3: memref<1x12xf32, #tpu.memory_space<vmem>>, %arg4: memref<8x12xf32, #tpu.memory_space<vmem>>) attributes {dimension_semantics = [#tpu.dimension_semantics<parallel>], iteration_bounds = array<i64: 1>, scalar_prefetch = 0 : i64, scratch_operands = 0 : i64, tpu.core_type = #tpu.core_type<tc>, window_params = [{transform_indices = @transform_0, window_bounds = array<i64: 8, 20>}, {pipeline_mode = #tpu.pipeline_mode<synchronous>, transform_indices = @transform_1, window_bounds = array<i64: 20, 12>}, {pipeline_mode = #tpu.pipeline_mode<synchronous>, transform_indices = @transform_2, window_bounds = array<i64: 1, 12>}, {transform_indices = @transform_3, window_bounds = array<i64: 8, 12>}]} {
    %c0 = arith.constant 0 : index
    %c0_0 = arith.constant 0 : index
    %0 = vector.load %arg1[%c0, %c0_0] : memref<8x20xf32, #tpu.memory_space<vmem>>, vector<8x20xf32>
    %c0_1 = arith.constant 0 : index
    %c0_2 = arith.constant 0 : index
    %1 = vector.load %arg2[%c0_1, %c0_2] : memref<20x12xf32, #tpu.memory_space<vmem>>, vector<20x12xf32>
    %cst = arith.constant dense<0.000000e+00> : vector<8x12xf32>
    %2 = tpu.matmul %0, %1, %cst {dimension_numbers = #tpu.dot_dimension_numbers<[1], [0], [0], [1], [0, 0, 1, 1], [], []>} : vector<8x20xf32>, vector<20x12xf32>, vector<8x12xf32> -> vector<8x12xf32>
    %c0_3 = arith.constant 0 : index
    %c0_4 = arith.constant 0 : index
    %3 = vector.load %arg3[%c0_3, %c0_4] : memref<1x12xf32, #tpu.memory_space<vmem>>, vector<1x12xf32>
    %4 = vector.broadcast %3 : vector<1x12xf32> to vector<8x12xf32>
    %5 = arith.addf %2, %4 : vector<8x12xf32>
    %cst_5 = arith.constant dense<0xFF800000> : vector<8xf32>
    %6 = vector.multi_reduction <maximumf>, %5, %cst_5 [1] : vector<8x12xf32> to vector<8xf32>
    %7 = vector.shape_cast %6 : vector<8xf32> to vector<8x1xf32>
    %8 = vector.broadcast %7 : vector<8x1xf32> to vector<8x12xf32>
    %9 = arith.subf %5, %8 : vector<8x12xf32>
    %10 = math.exp %9 : vector<8x12xf32>
    %cst_6 = arith.constant dense<0.000000e+00> : vector<8xf32>
    %11 = vector.multi_reduction <add>, %10, %cst_6 [1] : vector<8x12xf32> to vector<8xf32>
    %12 = vector.shape_cast %11 : vector<8xf32> to vector<8x1xf32>
    %13 = vector.broadcast %12 : vector<8x1xf32> to vector<8x12xf32>
    %14 = arith.divf %10, %13 : vector<8x12xf32>
    %c0_7 = arith.constant 0 : index
    %c0_8 = arith.constant 0 : index
    %15 = vector.load %arg4[%c0_7, %c0_8] : memref<8x12xf32, #tpu.memory_space<vmem>>, vector<8x12xf32>
    tpu.vector_store %arg4[%c0_7, %c0_8], %14 {strides = array<i32>} : memref<8x12xf32, #tpu.memory_space<vmem>>, vector<8x12xf32>,
    return
  }
  func.func @transform_0(%arg0: i32) -> (i32, i32) {
    %c0_i32 = arith.constant 0 : i32
    %c0_i32_0 = arith.constant 0 : i32
    return %arg0, %c0_i32 : i32, i32
  }
  func.func @transform_1(%arg0: i32) -> (i32, i32) {
    %c0_i32 = arith.constant 0 : i32
    %c0_i32_0 = arith.constant 0 : i32
    %c0_i32_1 = arith.constant 0 : i32
    return %c0_i32, %c0_i32_0 : i32, i32
  }
  func.func @transform_2(%arg0: i32) -> (i32, i32) {
    %c0_i32 = arith.constant 0 : i32
    %c0_i32_0 = arith.constant 0 : i32
    %c0_i32_1 = arith.constant 0 : i32
    return %c0_i32, %c0_i32_0 : i32, i32
  }
  func.func @transform_3(%arg0: i32) -> (i32, i32) {
    %c0_i32 = arith.constant 0 : i32
    %c0_i32_0 = arith.constant 0 : i32
    return %arg0, %c0_i32 : i32, i32
  }
}

</mosaic_0001>

<bundles_post_ra>
// kernel: tpu_custom_call.1
= control target key start
LH: loop header
LB: loop body
LE: loop exit
PB: predicated region body
PF: predicated region fallthrough
CT: control target
= control target key end

     0   :  { %vm27_vm0 = vcmask 1043456   ;;  %s169_s0 = inlined_call_operand.vmem [shape: f32[8,20], index: 0, kind: input, shape index: {}]   ;;  %s170_s1 = inlined_call_operand.vmem [shape: f32[20,12], index: 1, kind: input, shape index: {}]   ;;  %s171_s2 = inlined_call_operand.vmem [shape: f32[1,12], index: 2, kind: input, shape index: {}]   ;;  %s172_s3 = inlined_call_operand.hbm [shape: f32[8,12], index: 3, kind: output, shape index: {}]  }
   0x1   :  { %v18_v0 = vld [vmem:[%s170_s1 + $0x10] sm:$0xf]  ;;  %v17_v1 = vld [vmem:[%s170_s1 + $0x8] sm:$0xff]  ;;  %v16_v2 = vld [vmem:[%s170_s1] sm:$0xff] }
   0x2   :  { %93 = vmatpush.msk.msra.mxu0 %vm27_vm0, %v18_v0 }
   0x3   :  { %8 = vsyncpa [#allocation3], 0  ;;  %v15_v3 = vld [vmem:[%s169_s0] sm:$0xff]  ;;  %vm23_vm1 = vcmask 162816   ;;  %vm51_vm2 = vcmask 97280   ;;  %s127_s0 = smov [#allocation2]  }
   0x4   :  { %45 = vmatpush.msra.mxu0 %v17_v1  ;;  %v96_v4 = vld [vmem:[%s171_s2] ss:$0 sm:$0xff]  ;;  %s82_s1 = sshll.u32 %s127_s0, 4  ;;  %s84_s23 = sshll.u32 %s172_s3, 4  ;;  %s83_s1 = int_to_ptr.vmem [resolvable:$true] %s82_s1  ;;  %s85_s23 = int_to_ptr.hbm [resolvable:$true] %s84_s23 }
   0x6   :  { %46 = vmatpush.msra.mxu0 %v16_v2 }
   0x7   :  { %94 = vmatmul.msk.f32.vlgmr.msra.gmra.mxu0 %vm23_vm1, %v15_v3 }
  0x84   :  { %v48_v5 = vpop.f32.mrf.mxu0 }
  0x85   :  { %v49_v6 = vadd.f32 %v96_v4, %v48_v5 }
  0x87   :  { %v52_v7 = vsel %vm51_vm2, %v49_v6, -inf }
  0x88   :  { %53 = vmax.xlane.f32.xlu0 %v52_v7 }
  0xfb   :  { %v54_v8 = vpop.xlane.xlu0 %53 }
  0xfc   :  { %v55_v9 = vsub.f32 %v49_v6, %v54_v8 }
  0xfe   :  { %v56_v10 = vmul.f32 1.442695, %v55_v9 }
 0x100   :  { %97 = vpow2.f32 %v56_v10 }
 0x106   :  { %v98_v11 = vpop.eup %97 }
 0x107   :  { %v58_v12 = vsel %vm51_vm2, %v98_v11, 0.0 }
 0x108   :  { %59 = vadd.xlane.f32.xlu0 %v58_v12 }
 0x17b   :  { %v60_v13 = vpop.xlane.xlu0 %59 }
 0x17c   :  { %99 = vrcp.f32 %v60_v13  ;;  %v72_v17 = vand.u32 2147483648, %v60_v13  ;;  %v70_v19 = vand.u32 2147483647, %v60_v13  ;;  %vm66_vm4 = vweird.f32 %v60_v13 }
 0x17e   :  { %v73_v21 = vor.u32 1.1754944e-38, %v72_v17  ;;  %vm71_vm6 = vcmp.eq.f32.partialorder %v70_v19, 8.507059e+37 }
 0x182   :  { %v100_v14 = vpop.eup %99 }
 0x183   :  { %v62_v15 = vmul.f32 %v100_v14, %v60_v13  ;;  %vm67_vm3 = vweird.f32 %v100_v14 }
 0x184   :  { %vm68_vm5 = vmor %vm66_vm4, %vm67_vm3 }
 0x185   :  { %v63_v16 = vsub.f32 1.0, %v62_v15 }
 0x187   :  { %v64_v18 = vmul.f32 %v100_v14, %v63_v16 }
 0x189   :  { %v65_v20 = vadd.f32 %v100_v14, %v64_v18 }
 0x18b   :  { %v69_v22 = vsel %vm68_vm5, %v100_v14, %v65_v20 }
 0x18c   :  { %v74_v23 = vsel %vm71_vm6, %v73_v21, %v69_v22 }
 0x18d   :  { %v75_v24 = vmul.f32 %v98_v11, %v74_v23 }
 0x18f   :  { %76 = vst.msk [vmem:[#allocation2] sm:$0xff] %vm51_vm2, %v75_v24 }
 0x190   :  { %87 = dma.vmem_to_hbm [thread:$0]  %s83_s1, 128, %s85_s23, [#allocation3]  }
 0x191   :  { %125 = dma.done.wait [#allocation3], 128  }
 0x192   :  { %126 = vsyncadd [#allocation3], 4294967168 }
 0x193   :  { %92 = vsyncpa [#allocation3], 1 }

</bundles_post_ra>
